<compile_context>
chip_gen: v7x
topology: tpu7x:2x2x1
jax: 0.10.0
libtpu: 0.0.40
codegen_flags: <defaults>
</compile_context>

<pallas_src>
import functools

import jax
import jax.numpy as jnp
from jax.experimental import pallas as pl
from jax.experimental.pallas import tpu as pltpu


def _round_up(x, m):
    return ((x + m - 1) // m) * m


def _dfc_loss_kernel(scalars_ref, logits_ref, targets_ref, out_ref, acc_ref, *,
                     gamma, n_total, tiles_per_chunk):
    p = pl.program_id(0)            # parallel batch chunk (megacore axis)
    i = pl.program_id(1)            # reduction over tiles within the chunk
    tile_n, c = logits_ref.shape

    # Zero the running-sum accumulator at the start of every chunk.
    @pl.when(i == 0)
    def _():
        acc_ref[...] = jnp.zeros_like(acc_ref)

    inv_temperature = scalars_ref[0]
    penalty_weight = scalars_ref[1]
    out_scale = scalars_ref[2]

    logits = logits_ref[...].astype(jnp.float32)             # (tile_n, C) f32 compute
    scaled = logits * inv_temperature

    # Numerically stable softmax pieces; exp() evaluated exactly once per tile.
    row_max = jnp.max(scaled, axis=1, keepdims=True)          # (tile_n, 1)
    shifted = scaled - row_max
    exp_shifted = jnp.exp(shifted)                            # single N x C EUP pass
    sum_exp = jnp.sum(exp_shifted, axis=1, keepdims=True)     # (tile_n, 1)
    lse = jnp.log(sum_exp)
    # Exact reciprocal: approx=True would trade accuracy for ~nothing (kernel is HBM-bound).
    inv_sum = pl.reciprocal(sum_exp)

    # One-hot "gather" of the target class: (1, C) iota broadcast vs (tile_n, 1) targets.
    col_ids = jax.lax.broadcasted_iota(jnp.int32, (1, c), 1)
    onehot = col_ids == targets_ref[...]                      # (tile_n, C) bool
    target_shifted = jnp.sum(jnp.where(onehot, shifted, 0.0), axis=1, keepdims=True)
    target_logp = target_shifted - lse                        # log p_t
    target_p = jnp.exp(target_logp)                           # p_t

    one_minus_p = 1.0 - target_p
    if gamma == 2.0:
        focal_w = one_minus_p * one_minus_p                   # VPU square, no pow
    elif gamma == 1.0:
        focal_w = one_minus_p
    else:
        focal_w = one_minus_p ** gamma
    focal = focal_w * (-target_logp)                          # (tile_n, 1)

    # entropy = -sum(p * log p) = lse - (1/sum_exp) * sum(exp_shifted * shifted)
    s_xs = jnp.sum(exp_shifted * shifted, axis=1, keepdims=True)
    entropy = lse - inv_sum * s_xs                            # (tile_n, 1)

    # Mask the ragged tail and any clamped duplicate tiles with a NaN-safe select
    # (undefined tail-block data may contain Inf/NaN; multiply-by-zero would not sanitize).
    tile_idx = p * tiles_per_chunk + i
    row_ids = tile_idx * tile_n + jax.lax.broadcasted_iota(jnp.int32, (tile_n, 1), 0)
    contrib = jnp.where(row_ids < n_total, focal - penalty_weight * entropy, 0.0)

    acc_ref[...] += jnp.sum(contrib, axis=0, keepdims=True)   # (1, 1) running sum

    # Emit this chunk's (already scaled) partial once, on its last tile.
    @pl.when(i == pl.num_programs(1) - 1)
    def _():
        out_ref[...] = jnp.broadcast_to(acc_ref[...] * out_scale, out_ref.shape)


def _choose_tile_n(n, c, itemsize):
    """Largest batch tile keeping double-buffered inputs well inside a 32 MiB VMEM plan."""
    lane_c = max(_round_up(c, 128), 128)
    # logits rows (lane-padded, input dtype) + targets rows ((tile,1) pads to 128 lanes, i32),
    # each double-buffered by the auto-pipeline.
    bytes_per_row = 2 * lane_c * itemsize + 2 * 128 * 4
    budget = 16 * 1024 * 1024
    max_rows = max(8, (budget // bytes_per_row) // 8 * 8)
    return min(1024, max_rows)


def dynamic_focal_confidence_loss(logits, targets, *,
                                  weight=None,
                                  gamma=2.0,
                                  init_penalty=0.05,
                                  final_penalty=0.2,
                                  total_epochs=100,
                                  reduction='mean',
                                  initial_temperature=1.5,
                                  final_temperature=1.0,
                                  current_epoch=0,
                                  tile_n=None):
    """Pallas-backed forward pass of DynamicFocalConfidenceLoss."""
    if weight is not None:
        # TODO(synk): per-class weight tensor (weight != None) not implemented.
        raise NotImplementedError("class weights are not supported")
    if reduction not in ("mean", "sum"):
        # TODO(synk): reduction='none' needs a per-sample output; only scalar reductions here.
        raise NotImplementedError("only 'mean' and 'sum' reductions are supported")

    n, c = logits.shape
    itemsize = jnp.dtype(logits.dtype).itemsize

    # Epoch schedule -> runtime SMEM scalars (no epoch-dependent constants baked into the kernel).
    progress = min(1.0, current_epoch / total_epochs)
    penalty_weight = init_penalty + progress * (final_penalty - init_penalty)
    temperature = initial_temperature - progress * (initial_temperature - final_temperature)
    out_scale = (1.0 / n) if reduction == "mean" else 1.0
    scalars = jnp.array([1.0 / temperature, penalty_weight, out_scale], dtype=jnp.float32)

    if tile_n is None:
        tile_n = _choose_tile_n(n, c, itemsize)
    tile_n = int(tile_n)
    if tile_n >= n:
        tile_n = n                            # single full-extent block (always legal)
    else:
        tile_n = max(8, (tile_n // 8) * 8)    # partial tiles need sublane-aligned blocks

    total_tiles = -(-n // tile_n)             # no host-side padding of logits
    num_chunks = 2 if total_tiles >= 2 else 1  # megacore: parallel chunks help v7x (harmless elsewhere)
    tiles_per_chunk = -(-total_tiles // num_chunks)
    last_tile = total_tiles - 1

    targets_2d = targets.astype(jnp.int32).reshape(n, 1)

    # VMEM plan: double-buffered tiles + headroom; 32 MiB floor is safe on v7x (64 MiB physical).
    lane_c = max(_round_up(c, 128), 128)
    tile_bytes = 2 * tile_n * lane_c * itemsize + 2 * tile_n * 128 * 4
    vmem_limit = max(32 * 1024 * 1024, _round_up(tile_bytes + (4 << 20), 1 << 20))
    # TODO(synk): vocab-scale C where even an 8-row tile overflows v7x's 64 MiB VMEM needs a
    # C-tiled (online-softmax) variant.

    def block_map(pc, it):
        # Clamp so an over-provisioned trailing tile of the last chunk re-reads a valid tile;
        # its rows are masked out in-kernel via row_ids >= n.
        return (jnp.minimum(pc * tiles_per_chunk + it, last_tile), 0)

    kernel = functools.partial(_dfc_loss_kernel,
                               gamma=float(gamma),
                               n_total=int(n),
                               tiles_per_chunk=int(tiles_per_chunk))

    out = pl.pallas_call(
        kernel,
        out_shape=jax.ShapeDtypeStruct((num_chunks * 8, 128), jnp.float32),
        grid_spec=pltpu.PrefetchScalarGridSpec(
            num_scalar_prefetch=0,
            grid=(num_chunks, tiles_per_chunk),
            in_specs=[
                pl.BlockSpec(memory_space=pltpu.MemorySpace.SMEM),  # epoch scalars (3,) f32
                pl.BlockSpec((tile_n, c), block_map),               # logits tile
                pl.BlockSpec((tile_n, 1), block_map),               # targets tile
            ],
            out_specs=pl.BlockSpec((8, 128), lambda pc, it: (pc, 0)),  # per-chunk partial
            scratch_shapes=[pltpu.VMEM((1, 1), jnp.float32)],          # running sum
        ),
        compiler_params=pltpu.CompilerParams(
            dimension_semantics=("parallel", "arbitrary"),
            vmem_limit_bytes=int(vmem_limit),
        ),
    )(scalars, logits, targets_2d)

    # Each chunk wrote an (8,128) block filled with its partial; pick one value per chunk and sum.
    partials = out[0::8, 0]
    return jnp.sum(partials)


def _reference_loss(logits, targets, *, gamma=2.0, init_penalty=0.05,
                    final_penalty=0.2, total_epochs=100,
                    initial_temperature=1.5, final_temperature=1.0,
                    current_epoch=0):
    """Pure-JAX reference mirroring the PyTorch forward."""
    progress = min(1.0, current_epoch / total_epochs)
    penalty_weight = init_penalty + progress * (final_penalty - init_penalty)
    temperature = initial_temperature - progress * (initial_temperature - final_temperature)
    scaled = logits.astype(jnp.float32) / temperature
    log_probs = jax.nn.log_softmax(scaled, axis=1)
    probs = jnp.exp(log_probs)
    nn = logits.shape[0]
    target_logp = log_probs[jnp.arange(nn), targets]
    target_p = probs[jnp.arange(nn), targets]
    focal = ((1.0 - target_p) ** gamma) * (-target_logp)
    entropy = -jnp.sum(probs * log_probs, axis=1)
    return jnp.mean(focal) - penalty_weight * jnp.mean(entropy)


if __name__ == "__main__":
    key = jax.random.PRNGKey(0)
    k1, k2, k3, k4, k5, k6 = jax.random.split(key, 6)

    # Case 1: batch=8, classes=32, epoch 0 (single tile, single chunk, initial schedule).
    N1, C1 = 8, 32
    logits1 = jax.random.normal(k1, (N1, C1), dtype=jnp.float32)
    targets1 = jax.random.randint(k2, (N1,), 0, C1, dtype=jnp.int32)
    loss1 = jax.block_until_ready(dynamic_focal_confidence_loss(logits1, targets1))
    ref1 = _reference_loss(logits1, targets1)
    assert jnp.allclose(loss1, ref1, atol=1e-4, rtol=1e-4), (loss1, ref1)

    # Case 2: batch=20 (not a multiple of 8), epoch 50 (mid-schedule runtime scalars).
    N2, C2 = 20, 32
    logits2 = jax.random.normal(k3, (N2, C2), dtype=jnp.float32)
    targets2 = jax.random.randint(k4, (N2,), 0, C2, dtype=jnp.int32)
    loss2 = jax.block_until_ready(
        dynamic_focal_confidence_loss(logits2, targets2, current_epoch=50))
    ref2 = _reference_loss(logits2, targets2, current_epoch=50)
    assert jnp.allclose(loss2, ref2, atol=1e-4, rtol=1e-4), (loss2, ref2)

    # Case 3: bf16 logits, ragged multi-tile batch (300 rows, tile 64 -> 5 tiles split across
    # 2 parallel chunks with one clamped/masked trailing tile), epoch 100 (final schedule).
    N3, C3 = 300, 128
    logits3 = jax.random.normal(k5, (N3, C3), dtype=jnp.float32).astype(jnp.bfloat16)
    targets3 = jax.random.randint(k6, (N3,), 0, C3, dtype=jnp.int32)
    loss3 = jax.block_until_ready(
        dynamic_focal_confidence_loss(logits3, targets3, current_epoch=100, tile_n=64))
    ref3 = _reference_loss(logits3, targets3, current_epoch=100)
    assert jnp.allclose(loss3, ref3, atol=1e-3, rtol=1e-3), (loss3, ref3)

    print("KERNEL_OK")
</pallas_src>

<mosaic_0001>
module attributes {stable_mosaic.version = 11 : i64} {
  func.func @_dfc_loss_kernel(%arg0: i32, %arg1: i32, %arg2: memref<3xf32, #tpu.memory_space<smem>>, %arg3: memref<8x32xf32, #tpu.memory_space<vmem>>, %arg4: memref<8x1xi32, #tpu.memory_space<vmem>>, %arg5: memref<8x128xf32, #tpu.memory_space<vmem>>, %arg6: memref<1x1xf32, #tpu.memory_space<vmem>>) attributes {dimension_semantics = [#tpu.dimension_semantics<parallel>, #tpu.dimension_semantics<arbitrary>], iteration_bounds = array<i64: 1, 1>, scalar_prefetch = 0 : i64, scratch_operands = 1 : i64, tpu.core_type = #tpu.core_type<tc>, window_params = [{transform_indices = @transform_0, window_bounds = array<i64: 3>}, {transform_indices = @transform_1, window_bounds = array<i64: 8, 32>}, {transform_indices = @transform_2, window_bounds = array<i64: 8, 1>}, {transform_indices = @transform_3, window_bounds = array<i64: 8, 128>}]} {
    %c0_i32 = arith.constant 0 : i32
    %0 = arith.cmpi eq, %arg1, %c0_i32 : i32
    %1 = arith.extui %0 : i1 to i32
    %c0_i32_0 = arith.constant 0 : i32
    %2 = arith.cmpi ne, %1, %c0_i32_0 : i32
    scf.if %2 {
      %cst_20 = arith.constant 0.000000e+00 : f32
      %61 = vector.broadcast %cst_20 : f32 to vector<1x1xf32>
      %c0_21 = arith.constant 0 : index
      %c0_22 = arith.constant 0 : index
      %62 = vector.load %arg6[%c0_21, %c0_22] : memref<1x1xf32, #tpu.memory_space<vmem>>, vector<1x1xf32>
      tpu.vector_store %arg6[%c0_21, %c0_22], %61 {strides = array<i32>} : memref<1x1xf32, #tpu.memory_space<vmem>>, vector<1x1xf32>,
    } else {
    }
    %c0 = arith.constant 0 : index
    %3 = memref.load %arg2[%c0] : memref<3xf32, #tpu.memory_space<smem>>
    %c1 = arith.constant 1 : index
    %4 = memref.load %arg2[%c1] : memref<3xf32, #tpu.memory_space<smem>>
    %c2 = arith.constant 2 : index
    %5 = memref.load %arg2[%c2] : memref<3xf32, #tpu.memory_space<smem>>
    %c0_1 = arith.constant 0 : index
    %c0_2 = arith.constant 0 : index
    %6 = vector.load %arg3[%c0_1, %c0_2] : memref<8x32xf32, #tpu.memory_space<vmem>>, vector<8x32xf32>
    %7 = vector.broadcast %3 : f32 to vector<8x32xf32>
    %8 = arith.mulf %6, %7 : vector<8x32xf32>
    %cst = arith.constant dense<0xFF800000> : vector<8xf32>
    %9 = vector.multi_reduction <maximumf>, %8, %cst [1] : vector<8x32xf32> to vector<8xf32>
    %10 = vector.shape_cast %9 : vector<8xf32> to vector<8x1xf32>
    %11 = vector.broadcast %10 : vector<8x1xf32> to vector<8x32xf32>
    %12 = arith.subf %8, %11 : vector<8x32xf32>
    %13 = math.exp %12 : vector<8x32xf32>
    %cst_3 = arith.constant dense<0.000000e+00> : vector<8xf32>
    %14 = vector.multi_reduction <add>, %13, %cst_3 [1] : vector<8x32xf32> to vector<8xf32>
    %15 = vector.shape_cast %14 : vector<8xf32> to vector<8x1xf32>
    %16 = math.log %15 : vector<8x1xf32>
    %17 = tpu.reciprocal %15 : vector<8x1xf32> -> vector<8x1xf32>
    %18 = tpu.iota {dimensions = array<i32: 1>} : vector<1x32xi32>
    %c0_4 = arith.constant 0 : index
    %c0_5 = arith.constant 0 : index
    %19 = vector.load %arg4[%c0_4, %c0_5] : memref<8x1xi32, #tpu.memory_space<vmem>>, vector<8x1xi32>
    %20 = vector.broadcast %18 : vector<1x32xi32> to vector<8x32xi32>
    %21 = vector.broadcast %19 : vector<8x1xi32> to vector<8x32xi32>
    %22 = arith.cmpi eq, %20, %21 : vector<8x32xi32>
    %cst_6 = arith.constant 0.000000e+00 : f32
    %23 = vector.broadcast %cst_6 : f32 to vector<8x32xf32>
    %24 = arith.select %22, %12, %23 : vector<8x32xi1>, vector<8x32xf32>
    %cst_7 = arith.constant dense<0.000000e+00> : vector<8xf32>
    %25 = vector.multi_reduction <add>, %24, %cst_7 [1] : vector<8x32xf32> to vector<8xf32>
    %26 = vector.shape_cast %25 : vector<8xf32> to vector<8x1xf32>
    %27 = arith.subf %26, %16 : vector<8x1xf32>
    %28 = math.exp %27 : vector<8x1xf32>
    %cst_8 = arith.constant 1.000000e+00 : f32
    %29 = vector.broadcast %cst_8 : f32 to vector<8x1xf32>
    %30 = arith.subf %29, %28 : vector<8x1xf32>
    %31 = arith.mulf %30, %30 : vector<8x1xf32>
    %cst_9 = arith.constant 0.000000e+00 : f32
    %32 = vector.broadcast %cst_9 : f32 to vector<8x1xf32>
    %33 = arith.subf %32, %27 : vector<8x1xf32>
    %34 = arith.mulf %31, %33 : vector<8x1xf32>
    %35 = arith.mulf %13, %12 : vector<8x32xf32>
    %cst_10 = arith.constant dense<0.000000e+00> : vector<8xf32>
    %36 = vector.multi_reduction <add>, %35, %cst_10 [1] : vector<8x32xf32> to vector<8xf32>
    %37 = vector.shape_cast %36 : vector<8xf32> to vector<8x1xf32>
    %38 = arith.mulf %17, %37 : vector<8x1xf32>
    %39 = arith.subf %16, %38 : vector<8x1xf32>
    %c1_i32 = arith.constant 1 : i32
    %40 = arith.muli %arg0, %c1_i32 : i32
    %41 = arith.addi %40, %arg1 : i32
    %c8_i32 = arith.constant 8 : i32
    %42 = arith.muli %41, %c8_i32 : i32
    %43 = tpu.iota {dimensions = array<i32: 0>} : vector<8x1xi32>
    %44 = vector.broadcast %42 : i32 to vector<8x1xi32>
    %45 = arith.addi %44, %43 : vector<8x1xi32>
    %c8_i32_11 = arith.constant 8 : i32
    %46 = vector.broadcast %c8_i32_11 : i32 to vector<8x1xi32>
    %47 = arith.cmpi slt, %45, %46 : vector<8x1xi32>
    %48 = vector.broadcast %4 : f32 to vector<8x1xf32>
    %49 = arith.mulf %48, %39 : vector<8x1xf32>
    %50 = arith.subf %34, %49 : vector<8x1xf32>
    %cst_12 = arith.constant 0.000000e+00 : f32
    %51 = vector.broadcast %cst_12 : f32 to vector<8x1xf32>
    %52 = arith.select %47, %50, %51 : vector<8x1xi1>, vector<8x1xf32>
    %c0_13 = arith.constant 0 : index
    %c0_14 = arith.constant 0 : index
    %53 = vector.load %arg6[%c0_13, %c0_14] : memref<1x1xf32, #tpu.memory_space<vmem>>, vector<1x1xf32>
    %cst_15 = arith.constant dense<0.000000e+00> : vector<1xf32>
    %54 = vector.multi_reduction <add>, %52, %cst_15 [0] : vector<8x1xf32> to vector<1xf32>
    %55 = vector.shape_cast %54 : vector<1xf32> to vector<1x1xf32>
    %56 = arith.addf %53, %55 : vector<1x1xf32>
    %c0_16 = arith.constant 0 : index
    %c0_17 = arith.constant 0 : index
    %57 = vector.load %arg6[%c0_16, %c0_17] : memref<1x1xf32, #tpu.memory_space<vmem>>, vector<1x1xf32>
    tpu.vector_store %arg6[%c0_16, %c0_17], %56 {strides = array<i32>} : memref<1x1xf32, #tpu.memory_space<vmem>>, vector<1x1xf32>,
    %c0_i32_18 = arith.constant 0 : i32
    %58 = arith.cmpi eq, %arg1, %c0_i32_18 : i32
    %59 = arith.extui %58 : i1 to i32
    %c0_i32_19 = arith.constant 0 : i32
    %60 = arith.cmpi ne, %59, %c0_i32_19 : i32
    scf.if %60 {
      %c0_20 = arith.constant 0 : index
      %c0_21 = arith.constant 0 : index
      %61 = vector.load %arg6[%c0_20, %c0_21] : memref<1x1xf32, #tpu.memory_space<vmem>>, vector<1x1xf32>
      %62 = vector.broadcast %5 : f32 to vector<1x1xf32>
      %63 = arith.mulf %61, %62 : vector<1x1xf32>
      %64 = vector.shape_cast %63 : vector<1x1xf32> to vector<1x1xf32>
      %65 = vector.broadcast %64 : vector<1x1xf32> to vector<8x128xf32>
      %c0_22 = arith.constant 0 : index
      %c0_23 = arith.constant 0 : index
      %66 = vector.load %arg5[%c0_22, %c0_23] : memref<8x128xf32, #tpu.memory_space<vmem>>, vector<8x128xf32>
      tpu.vector_store %arg5[%c0_22, %c0_23], %65 {strides = array<i32>} : memref<8x128xf32, #tpu.memory_space<vmem>>, vector<8x128xf32>,
    } else {
    }
    return
  }
  func.func @transform_0(%arg0: i32, %arg1: i32) -> i32 {
    %c0_i32 = arith.constant 0 : i32
    %c0_i32_0 = arith.constant 0 : i32
    return %c0_i32 : i32
  }
  func.func @transform_1(%arg0: i32, %arg1: i32) -> (i32, i32) {
    %c1_i32 = arith.constant 1 : i32
    %0 = arith.muli %arg0, %c1_i32 : i32
    %1 = arith.addi %0, %arg1 : i32
    %c0_i32 = arith.constant 0 : i32
    %2 = arith.minsi %1, %c0_i32 : i32
    %c0_i32_0 = arith.constant 0 : i32
    %c0_i32_1 = arith.constant 0 : i32
    return %2, %c0_i32_0 : i32, i32
  }
  func.func @transform_2(%arg0: i32, %arg1: i32) -> (i32, i32) {
    %c1_i32 = arith.constant 1 : i32
    %0 = arith.muli %arg0, %c1_i32 : i32
    %1 = arith.addi %0, %arg1 : i32
    %c0_i32 = arith.constant 0 : i32
    %2 = arith.minsi %1, %c0_i32 : i32
    %c0_i32_0 = arith.constant 0 : i32
    %c0_i32_1 = arith.constant 0 : i32
    return %2, %c0_i32_0 : i32, i32
  }
  func.func @transform_3(%arg0: i32, %arg1: i32) -> (i32, i32) {
    %c0_i32 = arith.constant 0 : i32
    %c0_i32_0 = arith.constant 0 : i32
    return %arg0, %c0_i32 : i32, i32
  }
}

</mosaic_0001>

<bundles_post_ra>
// kernel: tpu_custom_call.1
= control target key start
LH: loop header
LB: loop body
LE: loop exit
PB: predicated region body
PF: predicated region fallthrough
CT: control target
= control target key end

     0   :  { %8 = vsyncpa [#allocation5], 0  ;;  %s300_s0 = inlined_call_operand.vmem [shape: f32[3], index: 0, kind: input, shape index: {}]   ;;  %s301_s1 = inlined_call_operand.vmem [shape: f32[8,32], index: 1, kind: input, shape index: {}]   ;;  %s302_s2 = inlined_call_operand.vmem [shape: s32[8,1], index: 2, kind: input, shape index: {}]   ;;  %s303_s3 = inlined_call_operand.hbm [shape: f32[8,128], index: 3, kind: output, shape index: {}]  }
   0x1   :  { %9 = vsyncpa [#allocation4], 0  ;;  %s16_s14 = sshll.u32 %s300_s0, 4  ;;  %s17_s14 = int_to_ptr.vmem [resolvable:$true] %s16_s14 }
   0x2   :  { %s211_s15 = scalar_lea.vmem %s17_s14, 16  ;;  %p216_p1 = scmp.lt.s32.totalorder %s17_s14, %s17_s14 }
   0x3   :  { %p212_p0 = scmp.ne.s32.totalorder %s17_s14, %s211_s15  ;;  %p217_p2 = scmp.lt.s32.totalorder %s211_s15, %s211_s15 }
   0x5   :  { %p218_p3 = por %p217_p2, %p216_p1 }
   0x7   :  { %p219_p4 = pnand %p218_p3, %p212_p0 }
   0x9   :  { %222 = shalt.err (!%p219_p4)
}
   0xa   :  { %s249_s16 = smov [#allocation3]  }
   0xb   :  { %19 = dma.vmem_to_smem %s17_s14, 16, %s249_s16, [#allocation5]  }
   0xc   :  { %245 = dma.done.wait [#allocation5], 16  }
   0xd   :  { %246 = vsyncadd [#allocation5], 4294967280 }
   0xe   :  { %47 = sfence }
   0xf   :  { %s88_s17 = sld [smem:[#allocation3]]  ;;  %v250_v0 = vmov 0   ;;  %v91_v1 = vld [vmem:[%s301_s1] sm:$0xff]  ;;  %vm94_vm0 = vcmask 261120   ;;  %v107_v9 = vlaneseq  ;;  %vm86_vm2 = vcmask 0   ;;  %s195_s1 = sld [smem:[#allocation3 + $0x1]] }
  0x10   :  { %201 = vset.pattern.permute.xlu0 %v250_v0  ;;  %202 = vset.pattern.permute.xlu1 %v250_v0  ;;  %v109_v5 = vld [vmem:[%s302_s2] sm:$0xff]  ;;  %v251_v18 = vmov 0.0   ;;  %s196_s2 = sld [smem:[#allocation3 + $0x2]]  ;;  %s252_s21 = smov [#allocation6]  }
  0x11   :  { %v108_v10 = vand.u32 127, %v107_v9  ;;  %87 = vst.msk [vmem:[#allocation2] sm:$0x1] %vm86_vm2, %v251_v18  ;;  %v160_v45 = vshrl.u32 %v107_v9, 7  ;;  %s174_s22 = sshll.u32 %s252_s21, 4  ;;  %s175_s22 = int_to_ptr.vmem [resolvable:$true] %s174_s22 }
  0x12   :  { %s223_s23 = scalar_lea.vmem %s175_s22, 128  ;;  %p228_p6 = scmp.lt.s32.totalorder %s175_s22, %s175_s22 }
  0x13   :  { %v161_v47 = vsub.s32 0, %v160_v45  ;;  %p224_p5 = scmp.ne.s32.totalorder %s175_s22, %s223_s23  ;;  %p229_p7 = scmp.lt.s32.totalorder %s223_s23, %s223_s23 }
  0x15   :  { %v92_v2 = vstv %s88_s17  ;;  %v138_v31 = vstv %s195_s1  ;;  %p230_p8 = por %p229_p7, %p228_p6 }
  0x16   :  { %v93_v3 = vmul.f32 %v92_v2, %v91_v1  ;;  %v156_v46 = vstv %s196_s2 }
  0x17   :  { %p231_p9 = pnand %p230_p8, %p224_p5 }
  0x18   :  { %v95_v4 = vsel %vm94_vm0, %v93_v3, -inf  ;;  %v142_v42 = vld [vmem:[#allocation2] sm:$0x1] }
  0x19   :  { %96 = vmax.xlane.f32.xlu0 %v95_v4 }
  0x2f   :  { %111 = vperm.xlu0 %201, %v109_v5  }
  0xa6   :  { %v97_v6 = vpop.xlane.xlu0 %96 }
  0xa7   :  { %v98_v7 = vsub.f32 %v93_v3, %v97_v6 }
  0xa9   :  { %v99_v8 = vmul.f32 1.442695, %v98_v7 }
  0xab   :  { %203 = vpow2.f32 %v99_v8 }
  0xae   :  { %v112_v11 = vpop.permute.xlu0 %111 }
  0xaf   :  { %vm113_vm1 = vcmp.eq.s32.totalorder %v108_v10, %v112_v11 }
  0xb0   :  { %v114_v14 = vsel %vm113_vm1, %v98_v7, 0.0 }
  0xb1   :  { %v115_v15 = vsel %vm94_vm0, %v114_v14, 0.0 }
  0xb5   :  { %v204_v12 = vpop.eup %203 }
  0xb6   :  { %v101_v13 = vsel %vm94_vm0, %v204_v12, 0.0  ;;  %v125_v16 = vmul.f32 %v204_v12, %v98_v7 }
  0xb7   :  { %102 = vadd.xlane.f32.xlu1 %v101_v13 }
  0xb8   :  { %v126_v17 = vsel %vm94_vm0, %v125_v16, 0.0 }
  0xbb   :  { %116 = vadd.xlane.f32.xlu1 %v115_v15 }
  0xbf   :  { %127 = vadd.xlane.f32.xlu1 %v126_v17 }
 0x144   :  { %v103_v19 = vpop.xlane.xlu1 %102 }
 0x145   :  { %205 = vlog2.f32 %v103_v19 }
 0x146   :  { %207 = vrcp.f32 %v103_v19 }
 0x148   :  { %v117_v22 = vpop.xlane.xlu1 %116 }
 0x14c   :  { %v128_v26 = vpop.xlane.xlu1 %127 }
 0x14f   :  { %v206_v20 = vpop.eup %205 }
 0x150   :  { %v105_v21 = vmul.f32 0.6931472, %v206_v20  ;;  %v208_v25 = vpop.eup %207 }
 0x151   :  { %v129_v27 = vmul.f32 %v208_v25, %v128_v26 }
 0x152   :  { %v118_v23 = vsub.f32 %v117_v22, %v105_v21 }
 0x153   :  { %v130_v30 = vsub.f32 %v105_v21, %v129_v27 }
 0x154   :  { %v119_v24 = vmul.f32 1.442695, %v118_v23  ;;  %v123_v33 = vsub.f32 0.0, %v118_v23 }
 0x155   :  { %v139_v35 = vmul.f32 %v138_v31, %v130_v30 }
 0x156   :  { %209 = vpow2.f32 %v119_v24 }
 0x160   :  { %v210_v28 = vpop.eup %209 }
 0x161   :  { %v121_v29 = vsub.f32 1.0, %v210_v28 }
 0x163   :  { %v122_v32 = vmul.f32 %v121_v29, %v121_v29 }
 0x165   :  { %v124_v34 = vmul.f32 %v123_v33, %v122_v32 }
 0x167   :  { %v140_v36 = vsub.f32 %v124_v34, %v139_v35 }
 0x169   :  { %v143_v37 = vrot.slane %v140_v36, 4 }
 0x16b   :  { %v144_v38 = vadd.f32 %v143_v37, %v140_v36 }
 0x16d   :  { %v145_v39 = vrot.slane %v144_v38, 2 }
 0x16f   :  { %v146_v40 = vadd.f32 %v145_v39, %v144_v38 }
 0x171   :  { %v147_v41 = vrot.slane %v146_v40, 1 }
 0x173   :  { %v148_v43 = vadd.f32 %v147_v41, %v146_v40 }
 0x175   :  { %v149_v44 = vadd.f32 %v148_v43, %v142_v42 }
 0x177   :  { %151 = vst.msk [vmem:[#allocation2] sm:$0x1] %vm86_vm2, %v149_v44 }
 0x17e   :  { %v155_v48 = vld [vmem:[#allocation2] sm:$0x1] }
 0x17f   :  { %v157_v49 = vmul.f32 %v156_v46, %v155_v48 }
 0x181   :  { %v162_v50 = vrot.slane %v157_v49, %v161_v47 }
 0x183   :  { %164 = vperm.xlu1 %202, %v162_v50  }
 0x202   :  { %v165_v51 = vpop.permute.xlu1 %164 }
 0x203   :  { %167 = vst [vmem:[#allocation6] sm:$0xff] %v165_v51 }
 0x204   :  { %234 = shalt.err (!%p231_p9)
}
 0x205   :  { %s235_s26 = scalar_lea.hbm %s303_s3, 128 }
 0x206   :  { %p236_p10 = scmp.ne.s32.totalorder %s303_s3, %s235_s26  ;;  %p239_p11 = scmp.lt.u32.totalorder %s235_s26, %s303_s3 }
 0x208   :  { %p241_p12 = pnand %p239_p11, %p236_p10 }
 0x20a   :  { %244 = shalt.err (!%p241_p12)
}
 0x20b   :  { %177 = dma.vmem_to_hbm [thread:$0]  %s175_s22, 128, %s303_s3, [#allocation4]  }
 0x20c   :  { %247 = dma.done.wait [#allocation4], 128  }
 0x20d   :  { %248 = vsyncadd [#allocation4], 4294967168 }
 0x20e   :  { %181 = vsyncpa [#allocation4], 1 }
 0x20f   :  { %182 = vsyncpa [#allocation5], 1 }

</bundles_post_ra>
